<compile_context>
chip_gen: v5e
topology: v5e:2x2
jax: 0.10.0
libtpu: 0.0.40
codegen_flags: <defaults>
</compile_context>

<pallas_src>
import jax
import jax.numpy as jnp
from jax import lax
from jax.experimental import pallas as pl
from jax.experimental.pallas import tpu as pltpu

_VMEM = pltpu.MemorySpace.VMEM


def _fixed_hidden_mlp_kernel(x_ref, wb_ref, o_ref):
    # x_ref  : (B, 20)      input batch (any float dtype; cast to f32 in-kernel)
    # wb_ref : (2, 24, 20)  packed f32 params:
    #            [0, :20]  = W1 = W.T @ R (folded)   [0, 20] = b1 = b @ R + 1
    #            [1, :20]  = W.T                      [1, 20] = b
    #            rows 21..23 are zero padding (sublane alignment)
    # o_ref  : (1, 1)       final scalar:  sum(X) * 2^-n
    d = wb_ref.shape[-1]                      # feature dim (20), static

    x = x_ref[...].astype(jnp.float32)
    w1 = wb_ref[0, 0:d, :]
    b1 = wb_ref[0, d:d + 1, :]
    wt = wb_ref[1, 0:d, :]
    b2 = wb_ref[1, d:d + 1, :]

    # relu(linear(X) @ R + 1)  ==  relu(X @ W1 + b1)   (pre-folded)
    h = jnp.maximum(jnp.dot(x, w1, preferred_element_type=jnp.float32) + b1, 0.0)
    # X = linear(h)   (shared weights)
    y = jnp.dot(h, wt, preferred_element_type=jnp.float32) + b2

    # Global reductions kept as (1,1) vectors: lane reduce, then sublane reduce.
    s = jnp.sum(jnp.sum(y, axis=1, keepdims=True), axis=0, keepdims=True)
    a = jnp.sum(jnp.sum(jnp.abs(y), axis=1, keepdims=True), axis=0, keepdims=True)

    # Closed form of:  while a > 1: (s, a) = (s/2, a/2);  return s
    # n = ceil(log2(a)) for a > 1, read exactly from the exponent bits.
    # (Halving is exact in fp32; equivalence to the reference holds outside the
    #  subnormal range, where any deviation is <= 1 ulp of a denormal.)
    a_bits = pltpu.bitcast(a, jnp.int32)                          # sign bit is 0
    exp = jnp.right_shift(a_bits, 23) - 127                       # unbiased exponent
    frac = jnp.bitwise_and(a_bits, jnp.int32(0x7FFFFF))
    n = jnp.where(a > 1.0, exp + jnp.where(frac != 0, 1, 0), 0)   # int32 (1,1)

    # scale = 2^-n built exactly from bits; split into two normal power-of-two
    # factors so even n ~ 128 (a near fp32 max) never needs a subnormal scale.
    n1 = jnp.minimum(n, 64)
    n2 = n - n1
    scale1 = pltpu.bitcast(jnp.left_shift(127 - n1, 23), jnp.float32)
    scale2 = pltpu.bitcast(jnp.left_shift(127 - n2, 23), jnp.float32)

    o_ref[...] = (s * scale1) * scale2


def prepare_params(linear_w, linear_b, rand_weight):
    """One-time parameter prep (hoisted out of the per-call hot path).

    Returns a single packed (2, 24, 20) f32 buffer holding both folded and
    plain weights with their biases appended as an extra row (plus zero pad
    to a sublane multiple), so the kernel needs only ONE constant input DMA.
    """
    wt = linear_w.astype(jnp.float32).T              # (20, 20): y = x @ W.T + b
    rw = rand_weight.astype(jnp.float32)             # (20, 20) fixed, no grad
    b = linear_b.astype(jnp.float32)                 # (20,)
    w1 = wt @ rw                                     # fold first linear into R
    b1 = b @ rw + 1.0                                # fold bias and the "+ 1"

    d = wt.shape[0]
    pad_rows = (-(d + 1)) % 8                        # 21 -> 24 sublanes

    def pack(mat, vec):
        return jnp.concatenate(
            [mat, vec[None, :], jnp.zeros((pad_rows, d), jnp.float32)], axis=0)

    return jnp.stack([pack(w1, b1), pack(wt, b)]).astype(jnp.float32)  # (2,24,20)


@jax.jit
def fixed_hidden_mlp(x, wbpack):
    """Hot path: one pallas_call (2 input DMAs) returning the scalar sum."""
    B, d = x.shape
    cost = pl.CostEstimate(
        flops=2 * 2 * B * d * d,                           # two matmuls
        bytes_accessed=int(x.size * x.dtype.itemsize + wbpack.size * 4 + 4),
        transcendentals=0,
    )
    out = pl.pallas_call(
        _fixed_hidden_mlp_kernel,
        out_shape=jax.ShapeDtypeStruct((1, 1), jnp.float32),
        in_specs=[
            pl.BlockSpec(memory_space=_VMEM),  # x       (B, 20), caller dtype
            pl.BlockSpec(memory_space=_VMEM),  # params  (2, 24, 20) f32
        ],
        out_specs=pl.BlockSpec(memory_space=_VMEM),
        cost_estimate=cost,
    )(x, wbpack)
    return out[0, 0]


if __name__ == "__main__":
    key = jax.random.PRNGKey(0)
    k_x, k_w, k_b, k_rw = jax.random.split(key, 4)

    B = 8  # batch of 20-dim feature vectors
    x = jax.random.normal(k_x, (B, 20), dtype=jnp.float32)

    # nn.Linear(20, 20): weight (20, 20), bias (20,), U(-1/sqrt(20), 1/sqrt(20))
    bound = 1.0 / jnp.sqrt(20.0)
    linear_w = jax.random.uniform(k_w, (20, 20), jnp.float32, -bound, bound)
    linear_b = jax.random.uniform(k_b, (20,), jnp.float32, -bound, bound)
    # torch.rand((20, 20)): U[0, 1)
    rand_weight = jax.random.uniform(k_rw, (20, 20), jnp.float32, 0.0, 1.0)

    wbpack = prepare_params(linear_w, linear_b, rand_weight)
    out = jax.block_until_ready(fixed_hidden_mlp(x, wbpack))

    # Pure-JAX reference of the ORIGINAL (unfolded) forward, including the loop.
    def ref_forward(xv):
        h = xv @ linear_w.T + linear_b
        h = jnp.maximum(h @ rand_weight + 1.0, 0.0)
        h = h @ linear_w.T + linear_b
        h = lax.while_loop(lambda c: jnp.sum(jnp.abs(c)) > 1.0,
                           lambda c: c * 0.5, h)
        return jnp.sum(h)

    ref = ref_forward(x)
    assert out.shape == () and bool(jnp.isfinite(out))
    assert abs(float(out) - float(ref)) <= 1e-4 * max(1.0, abs(float(ref)))
    print("KERNEL_OK")
</pallas_src>

<mosaic_0001>
module attributes {stable_mosaic.version = 11 : i64} {
  func.func @_fixed_hidden_mlp_kernel(%arg0: memref<8x20xf32, #tpu.memory_space<vmem>>, %arg1: memref<2x24x20xf32, #tpu.memory_space<vmem>>, %arg2: memref<1x1xf32, #tpu.memory_space<vmem>>) attributes {dimension_semantics = [], scalar_prefetch = 0 : i64, scratch_operands = 0 : i64, tpu.core_type = #tpu.core_type<tc>} {
    %c0 = arith.constant 0 : index
    %c0_0 = arith.constant 0 : index
    %0 = vector.load %arg0[%c0, %c0_0] : memref<8x20xf32, #tpu.memory_space<vmem>>, vector<8x20xf32>
    %c0_1 = arith.constant 0 : index
    %c0_2 = arith.constant 0 : index
    %c0_3 = arith.constant 0 : index
    %1 = vector.load %arg1[%c0_1, %c0_2, %c0_3] : memref<2x24x20xf32, #tpu.memory_space<vmem>>, vector<1x20x20xf32>
    %2 = vector.shape_cast %1 : vector<1x20x20xf32> to vector<20x20xf32>
    %c0_4 = arith.constant 0 : index
    %c20 = arith.constant 20 : index
    %c0_5 = arith.constant 0 : index
    %3 = vector.load %arg1[%c0_4, %c20, %c0_5] : memref<2x24x20xf32, #tpu.memory_space<vmem>>, vector<1x1x20xf32>
    %4 = vector.shape_cast %3 : vector<1x1x20xf32> to vector<1x20xf32>
    %c1 = arith.constant 1 : index
    %c0_6 = arith.constant 0 : index
    %c0_7 = arith.constant 0 : index
    %5 = vector.load %arg1[%c1, %c0_6, %c0_7] : memref<2x24x20xf32, #tpu.memory_space<vmem>>, vector<1x20x20xf32>
    %6 = vector.shape_cast %5 : vector<1x20x20xf32> to vector<20x20xf32>
    %c1_8 = arith.constant 1 : index
    %c20_9 = arith.constant 20 : index
    %c0_10 = arith.constant 0 : index
    %7 = vector.load %arg1[%c1_8, %c20_9, %c0_10] : memref<2x24x20xf32, #tpu.memory_space<vmem>>, vector<1x1x20xf32>
    %8 = vector.shape_cast %7 : vector<1x1x20xf32> to vector<1x20xf32>
    %cst = arith.constant dense<0.000000e+00> : vector<8x20xf32>
    %9 = tpu.matmul %0, %2, %cst {dimension_numbers = #tpu.dot_dimension_numbers<[1], [0], [0], [1], [0, 0, 1, 1], [], []>} : vector<8x20xf32>, vector<20x20xf32>, vector<8x20xf32> -> vector<8x20xf32>
    %10 = vector.broadcast %4 : vector<1x20xf32> to vector<8x20xf32>
    %11 = arith.addf %9, %10 : vector<8x20xf32>
    %cst_11 = arith.constant 0.000000e+00 : f32
    %12 = vector.broadcast %cst_11 : f32 to vector<8x20xf32>
    %13 = arith.maximumf %11, %12 : vector<8x20xf32>
    %cst_12 = arith.constant dense<0.000000e+00> : vector<8x20xf32>
    %14 = tpu.matmul %13, %6, %cst_12 {dimension_numbers = #tpu.dot_dimension_numbers<[1], [0], [0], [1], [0, 0, 1, 1], [], []>} : vector<8x20xf32>, vector<20x20xf32>, vector<8x20xf32> -> vector<8x20xf32>
    %15 = vector.broadcast %8 : vector<1x20xf32> to vector<8x20xf32>
    %16 = arith.addf %14, %15 : vector<8x20xf32>
    %cst_13 = arith.constant dense<0.000000e+00> : vector<8xf32>
    %17 = vector.multi_reduction <add>, %16, %cst_13 [1] : vector<8x20xf32> to vector<8xf32>
    %18 = vector.shape_cast %17 : vector<8xf32> to vector<8x1xf32>
    %cst_14 = arith.constant dense<0.000000e+00> : vector<1xf32>
    %19 = vector.multi_reduction <add>, %18, %cst_14 [0] : vector<8x1xf32> to vector<1xf32>
    %20 = vector.shape_cast %19 : vector<1xf32> to vector<1x1xf32>
    %21 = math.absf %16 : vector<8x20xf32>
    %cst_15 = arith.constant dense<0.000000e+00> : vector<8xf32>
    %22 = vector.multi_reduction <add>, %21, %cst_15 [1] : vector<8x20xf32> to vector<8xf32>
    %23 = vector.shape_cast %22 : vector<8xf32> to vector<8x1xf32>
    %cst_16 = arith.constant dense<0.000000e+00> : vector<1xf32>
    %24 = vector.multi_reduction <add>, %23, %cst_16 [0] : vector<8x1xf32> to vector<1xf32>
    %25 = vector.shape_cast %24 : vector<1xf32> to vector<1x1xf32>
    %26 = tpu.bitcast %25 : vector<1x1xf32> -> vector<1x1xi32>
    %c23_i32 = arith.constant 23 : i32
    %27 = vector.broadcast %c23_i32 : i32 to vector<1x1xi32>
    %28 = arith.shrsi %26, %27 : vector<1x1xi32>
    %c127_i32 = arith.constant 127 : i32
    %29 = vector.broadcast %c127_i32 : i32 to vector<1x1xi32>
    %30 = arith.subi %28, %29 : vector<1x1xi32>
    %c8388607_i32 = arith.constant 8388607 : i32
    %31 = vector.broadcast %c8388607_i32 : i32 to vector<1x1xi32>
    %32 = arith.andi %26, %31 : vector<1x1xi32>
    %cst_17 = arith.constant 1.000000e+00 : f32
    %33 = vector.broadcast %cst_17 : f32 to vector<1x1xf32>
    %34 = arith.cmpf ogt, %25, %33 : vector<1x1xf32>
    %c0_i32 = arith.constant 0 : i32
    %35 = vector.broadcast %c0_i32 : i32 to vector<1x1xi32>
    %36 = arith.cmpi ne, %32, %35 : vector<1x1xi32>
    %c1_i32 = arith.constant 1 : i32
    %c0_i32_18 = arith.constant 0 : i32
    %37 = vector.broadcast %c1_i32 : i32 to vector<1x1xi32>
    %38 = vector.broadcast %c0_i32_18 : i32 to vector<1x1xi32>
    %39 = arith.select %36, %37, %38 : vector<1x1xi1>, vector<1x1xi32>
    %40 = arith.addi %30, %39 : vector<1x1xi32>
    %c0_i32_19 = arith.constant 0 : i32
    %41 = vector.broadcast %c0_i32_19 : i32 to vector<1x1xi32>
    %42 = arith.select %34, %40, %41 : vector<1x1xi1>, vector<1x1xi32>
    %c64_i32 = arith.constant 64 : i32
    %43 = vector.broadcast %c64_i32 : i32 to vector<1x1xi32>
    %44 = arith.minsi %42, %43 : vector<1x1xi32>
    %45 = arith.subi %42, %44 : vector<1x1xi32>
    %c127_i32_20 = arith.constant 127 : i32
    %46 = vector.broadcast %c127_i32_20 : i32 to vector<1x1xi32>
    %47 = arith.subi %46, %44 : vector<1x1xi32>
    %c23_i32_21 = arith.constant 23 : i32
    %48 = vector.broadcast %c23_i32_21 : i32 to vector<1x1xi32>
    %49 = arith.shli %47, %48 : vector<1x1xi32>
    %50 = tpu.bitcast %49 : vector<1x1xi32> -> vector<1x1xf32>
    %c127_i32_22 = arith.constant 127 : i32
    %51 = vector.broadcast %c127_i32_22 : i32 to vector<1x1xi32>
    %52 = arith.subi %51, %45 : vector<1x1xi32>
    %c23_i32_23 = arith.constant 23 : i32
    %53 = vector.broadcast %c23_i32_23 : i32 to vector<1x1xi32>
    %54 = arith.shli %52, %53 : vector<1x1xi32>
    %55 = tpu.bitcast %54 : vector<1x1xi32> -> vector<1x1xf32>
    %56 = arith.mulf %20, %50 : vector<1x1xf32>
    %57 = arith.mulf %56, %55 : vector<1x1xf32>
    %c0_24 = arith.constant 0 : index
    %c0_25 = arith.constant 0 : index
    %58 = vector.load %arg2[%c0_24, %c0_25] : memref<1x1xf32, #tpu.memory_space<vmem>>, vector<1x1xf32>
    tpu.vector_store %arg2[%c0_24, %c0_25], %57 {strides = array<i32>} : memref<1x1xf32, #tpu.memory_space<vmem>>, vector<1x1xf32>,
    return
  }
}

</mosaic_0001>

<bundles_post_ra>
// kernel: fixed_hidden_mlp.1
= control target key start
LH: loop header
LB: loop body
LE: loop exit
PB: predicated region body
PF: predicated region fallthrough
CT: control target
= control target key end

     0   :  { %vm27_vm0 = vcmask 1043456   ;;  %s226_s0 = inlined_call_operand.vmem [shape: f32[8,20], index: 0, kind: input, shape index: {}]   ;;  %s227_s1 = inlined_call_operand.vmem [shape: f32[2,24,20], index: 1, kind: input, shape index: {}]   ;;  %s228_s2 = inlined_call_operand.hbm [shape: f32[1,1], index: 2, kind: output, shape index: {}]  }
   0x1   :  { %v15_v0 = vld [vmem:[%s227_s1 + $0x10] sm:$0xf]  ;;  %v14_v1 = vld [vmem:[%s227_s1 + $0x8] sm:$0xff]  ;;  %v13_v2 = vld [vmem:[%s227_s1] sm:$0xff] }
   0x2   :  { %140 = vmatpush.msk.msra.mxu0 %vm27_vm0, %v15_v0 }
   0x3   :  { %7 = vsyncpa [#allocation3], 0  ;;  %v12_v3 = vld [vmem:[%s226_s0] sm:$0xff]  ;;  %vm23_vm1 = vcmask 162816   ;;  %v138_v4 = vld [vmem:[%s227_s1 + $0x28] sm:$0xf] }
   0x4   :  { %45 = vmatpush.msra.mxu0 %v14_v1  ;;  %142 = vmatpush.msk.msra.mxu1 %vm27_vm0, %v138_v4  ;;  %v137_v5 = vld [vmem:[%s227_s1 + $0x20] sm:$0xff]  ;;  %v136_v6 = vld [vmem:[%s227_s1 + $0x18] sm:$0xff]  ;;  %v147_v7 = vld [vmem:[%s227_s1 + $0x14] ss:$0 sm:$0xff]  ;;  %v175_v31 = vmov 0   ;;  %s127_s29 = sshll.u32 %s228_s2, 4  ;;  %s128_s29 = int_to_ptr.hbm [resolvable:$true] %s127_s29 }
   0x5   :  { %v148_v11 = vld [vmem:[%s227_s1 + $0x2c] ss:$0 sm:$0xff]  ;;  %s176_s1 = smov [#allocation2]   ;;  %vm118_vm5 = vcmask 0  }
   0x6   :  { %46 = vmatpush.msra.mxu0 %v13_v2  ;;  %73 = vmatpush.msra.mxu1 %v137_v5  ;;  %s125_s26 = sshll.u32 %s176_s1, 4  ;;  %s126_s26 = int_to_ptr.vmem [resolvable:$true] %s125_s26 }
   0x7   :  { %141 = vmatmul.msk.f32.vlgmr.msra.gmra.mxu0 %vm23_vm1, %v12_v3 }
   0x8   :  { %74 = vmatpush.msra.mxu1 %v136_v6 }
  0x84   :  { %v48_v8 = vpop.f32.mrf.mxu0 }
  0x85   :  { %v49_v9 = vadd.f32 %v147_v7, %v48_v8 }
  0x87   :  { %v51_v10 = vmax.f32 %v49_v9, 0.0 }
  0x89   :  { %143 = vmatmul.msk.f32.vlgmr.msra.gmra.mxu1 %vm23_vm1, %v51_v10 }
 0x106   :  { %v76_v12 = vpop.f32.mrf.mxu1 }
 0x107   :  { %v77_v13 = vadd.f32 %v148_v11, %v76_v12 }
 0x109   :  { %v88_v14 = vand.u32 2147483647, %v77_v13  ;;  %v79_v16 = vsel %vm23_vm1, %v77_v13, 0.0 }
 0x10b   :  { %v89_v15 = vsel %vm23_vm1, %v88_v14, 0.0 }
 0x10c   :  { %90 = vadd.xlane.f32.xlu0 %v89_v15 }
 0x114   :  { %80 = vadd.xlane.f32.xlu0 %v79_v16 }
 0x17f   :  { %v91_v17 = vpop.xlane.xlu0 %90 }
 0x180   :  { %v92_v18 = vrot.slane %v91_v17, 4 }
 0x182   :  { %v93_v19 = vadd.f32 %v92_v18, %v91_v17 }
 0x184   :  { %v94_v20 = vrot.slane %v93_v19, 2 }
 0x186   :  { %v95_v21 = vadd.f32 %v94_v20, %v93_v19 }
 0x187   :  { %v81_v22 = vpop.xlane.xlu0 %80 }
 0x188   :  { %v96_v23 = vrot.slane %v95_v21, 1  ;;  %v82_v24 = vrot.slane %v81_v22, 4 }
 0x18a   :  { %v97_v25 = vadd.f32 %v96_v23, %v95_v21  ;;  %v83_v26 = vadd.f32 %v82_v24, %v81_v22 }
 0x18c   :  { %v99_v27 = vshra.s32 %v97_v25, 23  ;;  %v101_v28 = vand.u32 8388607, %v97_v25  ;;  %v84_v29 = vrot.slane %v83_v26, 2  ;;  %vm102_vm3 = vcmp.gt.f32.partialorder %v97_v25, 1.0 }
 0x18e   :  { %v144_v30 = vadd.s32 4294967169, %v99_v27  ;;  %vm103_vm2 = vcmp.ne.s32.totalorder %v101_v28, 0  ;;  %v85_v33 = vadd.f32 %v84_v29, %v83_v26 }
 0x18f   :  { %v104_v32 = vsel %vm103_vm2, 1, %v175_v31 }
 0x190   :  { %v105_v34 = vadd.s32 %v144_v30, %v104_v32  ;;  %v86_v36 = vrot.slane %v85_v33, 1 }
 0x192   :  { %v106_v35 = vsel %vm102_vm3, %v105_v34, 0  ;;  %v87_v41 = vadd.f32 %v86_v36, %v85_v33 }
 0x193   :  { %vm107_vm4 = vcmp.lt.s32.totalorder %v106_v35, 64 }
 0x194   :  { %v108_v37 = vsel %vm107_vm4, %v106_v35, 64 }
 0x195   :  { %v110_v38 = vsub.s32 127, %v108_v37  ;;  %v109_v39 = vsub.s32 %v106_v35, %v108_v37 }
 0x197   :  { %v111_v40 = vshll.u32 %v110_v38, 23  ;;  %v113_v42 = vsub.s32 127, %v109_v39 }
 0x199   :  { %v116_v43 = vmul.f32 %v111_v40, %v87_v41  ;;  %v114_v44 = vshll.u32 %v113_v42, 23 }
 0x19b   :  { %v117_v45 = vmul.f32 %v116_v43, %v114_v44 }
 0x19d   :  { %119 = vst.msk [vmem:[#allocation2] sm:$0x1] %vm118_vm5, %v117_v45 }
 0x19e   :  { %130 = dma.vmem_to_hbm [thread:$0]  %s126_s26, 16, %s128_s29, [#allocation3]  }
 0x19f   :  { %173 = dma.done.wait [#allocation3], 16  }
 0x1a0   :  { %174 = vsyncadd [#allocation3], 4294967280 }
 0x1a1   :  { %135 = vsyncpa [#allocation3], 1 }

</bundles_post_ra>
